<compile_context>
chip_gen: v7x
topology: tpu7x:2x2x1
jax: 0.10.0
libtpu: 0.0.40
codegen_flags: <defaults>
</compile_context>

<pallas_src>
import functools

import jax
import jax.numpy as jnp
from jax.experimental import pallas as pl
from jax.experimental.pallas import tpu as pltpu


def _round_up(x: int, m: int) -> int:
    return ((x + m - 1) // m) * m


# ----------------- Kernel 1: per-node transform (transposed) -----------------
def _node_transform_kernel(rpt_ref, zt_ref, out_ref):
    # rpt_ref: (dim, dim) = (diag(d) R diag(d))^T
    # zt_ref:  (dim, tile_n) = z^T tile      -> out_ref: (dim, tile_n) = (z R')^T
    out_ref[...] = jnp.dot(
        rpt_ref[...], zt_ref[...], preferred_element_type=jnp.float32
    ).astype(out_ref.dtype)


# ------------------------- Kernel 2: per-edge scores -------------------------
def _edge_score_kernel(src_ref, dst_ref, out_ref):
    # src_ref/dst_ref: (dim, tile_e) f32 — features on sublanes, edges on lanes.
    # out_ref: (1, tile_e) lane-dense row.
    prod = src_ref[...] * dst_ref[...]                       # VPU, all 128 lanes
    out_ref[...] = jnp.sum(prod, axis=0, keepdims=True)      # sublane reduce


@functools.partial(jax.jit, static_argnames=("tile_e", "tile_n"))
def dedicom_forward(z, edge_index, d_rel, R, *, tile_e=16384, tile_n=4096):
    """DEDICOM decoder forward.

    z: (N, dim) f32 node embeddings, or a (z_src, z_dst) tuple (bipartite case).
    edge_index: (2, E) int32, d_rel: (dim, 1) f32, R: (dim, dim) f32.
    Returns (E,) f32 edge scores.
    """
    z_src, z_dst = z if isinstance(z, tuple) else (z, z)
    n_src, dim = z_src.shape
    E = edge_index.shape[1]

    d = d_rel.reshape(dim)
    r_prime = (d[:, None] * R) * d[None, :]        # fold diag(d) R diag(d) once

    # ---- per-node hoist in transposed layout: zs_t = R'^T @ z_src^T ---------
    # (N*dim^2 MXU flops instead of E*dim^2; output already (dim, N) so the
    # downstream gather/edge kernel never needs an (E, dim) transpose pass.)
    z_src_t = z_src.T                              # (dim, N), one small XLA pass
    tn = min(tile_n, _round_up(n_src, 128))
    tn = _round_up(tn, 128)
    n_pad = _round_up(n_src, tn)
    if n_pad != n_src:
        z_src_t = jnp.pad(z_src_t, ((0, 0), (0, n_pad - n_src)))

    zs_t = pl.pallas_call(
        _node_transform_kernel,
        out_shape=jax.ShapeDtypeStruct((dim, n_pad), jnp.float32),
        grid_spec=pltpu.PrefetchScalarGridSpec(
            num_scalar_prefetch=0,
            grid=(n_pad // tn,),
            in_specs=[
                pl.BlockSpec((dim, dim), lambda i: (0, 0)),
                pl.BlockSpec((dim, tn), lambda i: (0, i)),
            ],
            out_specs=pl.BlockSpec((dim, tn), lambda i: (0, i)),
        ),
        compiler_params=pltpu.CompilerParams(
            dimension_semantics=("parallel",)),
    )(r_prime.T, z_src_t)

    # ---- gather rows per edge (plain XLA gather, transposed layout) ---------
    # NOTE: materializes two (dim, E) arrays in HBM that the edge kernel
    # re-reads.  See TODO(synk) in the header about fusing this into the
    # kernel; casting to bf16 here would halve the gathered bytes at a small
    # accuracy cost and is left off to preserve f32 module semantics.
    src_gt = jnp.take(zs_t, edge_index[0], axis=1)           # (dim, E)
    dst_gt = jnp.take(z_dst.T, edge_index[1], axis=1)        # (dim, E)

    # ---- edge tiling: big lane-dense tiles, padded tail ----------------------
    # Per-input block ~2 MiB keeps per-step DMA well above the ~0.35us fixed
    # step cost on every generation while staying far under v7x's 64 MiB VMEM
    # (2 inputs x 2 buffers x 2 MiB = 8 MiB).  Clamp so the grid keeps >= 2
    # steps (v7x megacore) and tiles don't exceed the padded edge count.
    te_budget = max(128, ((2 * 1024 * 1024) // (dim * 4)) // 128 * 128)
    te = min(tile_e, te_budget, max(128, _round_up((E + 1) // 2, 128)))
    te = _round_up(te, 128)
    e_pad = _round_up(E, te)
    if e_pad != E:
        src_gt = jnp.pad(src_gt, ((0, 0), (0, e_pad - E)))
        dst_gt = jnp.pad(dst_gt, ((0, 0), (0, e_pad - E)))
    num_tiles = e_pad // te

    out_row = pl.pallas_call(
        _edge_score_kernel,
        out_shape=jax.ShapeDtypeStruct((1, e_pad), jnp.float32),
        grid_spec=pltpu.PrefetchScalarGridSpec(
            num_scalar_prefetch=0,
            grid=(num_tiles,),
            in_specs=[
                pl.BlockSpec((dim, te), lambda i: (0, i)),
                pl.BlockSpec((dim, te), lambda i: (0, i)),
            ],
            out_specs=pl.BlockSpec((1, te), lambda i: (0, i)),
        ),
        compiler_params=pltpu.CompilerParams(
            dimension_semantics=("parallel",),
            # Headroom for large tiles on v5e (16 MiB default scoped VMEM)
            # while staying below v7x's 64 MiB physical VMEM.
            vmem_limit_bytes=48 * 1024 * 1024),
    )(src_gt, dst_gt)
    return out_row[0, :E]


def _xavier_uniform(key, shape):
    fan_in, fan_out = shape[0], shape[1]
    bound = (6.0 / (fan_in + fan_out)) ** 0.5
    return jax.random.uniform(key, shape, jnp.float32, -bound, bound)


def _reference(z, edge_index, d_rel, R):
    z_src, z_dst = z if isinstance(z, tuple) else (z, z)
    src = z_src[edge_index[0]]
    dst = z_dst[edge_index[1]]
    d = d_rel.reshape(-1)
    out = jnp.matmul(src * d, R, precision=jax.lax.Precision.HIGHEST) * d
    return (out * dst).sum(axis=1)


if __name__ == "__main__":
    key = jax.random.PRNGKey(0)
    k_z, k_z2, k_e1, k_e2, k_R, k_D = jax.random.split(key, 6)

    N, dim, E = 64, 32, 1024                      # small synthetic graph
    relations = ["rel_a", "rel_b"]

    # Deterministic parameter init (shapes match nn.Module.__init__).
    R = _xavier_uniform(k_R, (dim, dim))
    D = {rel: _xavier_uniform(jax.random.fold_in(k_D, i), (dim, 1))
         for i, rel in enumerate(relations)}

    z = jax.random.normal(k_z, (N, dim), jnp.float32)
    edge_index = jnp.stack([
        jax.random.randint(k_e1, (E,), 0, N),
        jax.random.randint(k_e2, (E,), 0, N),
    ]).astype(jnp.int32)

    # Single-embedding path.
    out = dedicom_forward(z, edge_index, D["rel_a"], R)
    jax.block_until_ready(out)
    ref = _reference(z, edge_index, D["rel_a"], R)
    assert out.shape == (E,)
    assert jnp.allclose(out, ref, atol=2e-4, rtol=2e-4), "mismatch vs reference"

    # Tuple-z (bipartite) path from the PyTorch forward.
    z2 = jax.random.normal(k_z2, (N, dim), jnp.float32)
    out_t = dedicom_forward((z, z2), edge_index, D["rel_b"], R)
    jax.block_until_ready(out_t)
    ref_t = _reference((z, z2), edge_index, D["rel_b"], R)
    assert jnp.allclose(out_t, ref_t, atol=2e-4, rtol=2e-4), "mismatch (tuple z)"

    print("KERNEL_OK")
</pallas_src>

<mosaic_0001>
module attributes {stable_mosaic.version = 11 : i64} {
  func.func @_node_transform_kernel(%arg0: i32, %arg1: memref<32x32xf32, #tpu.memory_space<vmem>>, %arg2: memref<32x128xf32, #tpu.memory_space<vmem>>, %arg3: memref<32x128xf32, #tpu.memory_space<vmem>>) attributes {dimension_semantics = [#tpu.dimension_semantics<parallel>], iteration_bounds = array<i64: 1>, scalar_prefetch = 0 : i64, scratch_operands = 0 : i64, tpu.core_type = #tpu.core_type<tc>, window_params = [{pipeline_mode = #tpu.pipeline_mode<synchronous>, transform_indices = @transform_0, window_bounds = array<i64: 32, 32>}, {transform_indices = @transform_1, window_bounds = array<i64: 32, 128>}, {transform_indices = @transform_2, window_bounds = array<i64: 32, 128>}]} {
    %c0 = arith.constant 0 : index
    %c0_0 = arith.constant 0 : index
    %0 = vector.load %arg1[%c0, %c0_0] : memref<32x32xf32, #tpu.memory_space<vmem>>, vector<32x32xf32>
    %c0_1 = arith.constant 0 : index
    %c0_2 = arith.constant 0 : index
    %1 = vector.load %arg2[%c0_1, %c0_2] : memref<32x128xf32, #tpu.memory_space<vmem>>, vector<32x128xf32>
    %cst = arith.constant dense<0.000000e+00> : vector<32x128xf32>
    %2 = tpu.matmul %0, %1, %cst {dimension_numbers = #tpu.dot_dimension_numbers<[1], [0], [0], [1], [0, 0, 1, 1], [], []>} : vector<32x32xf32>, vector<32x128xf32>, vector<32x128xf32> -> vector<32x128xf32>
    %c0_3 = arith.constant 0 : index
    %c0_4 = arith.constant 0 : index
    %3 = vector.load %arg3[%c0_3, %c0_4] : memref<32x128xf32, #tpu.memory_space<vmem>>, vector<32x128xf32>
    tpu.vector_store %arg3[%c0_3, %c0_4], %2 {strides = array<i32>} : memref<32x128xf32, #tpu.memory_space<vmem>>, vector<32x128xf32>,
    return
  }
  func.func @transform_0(%arg0: i32) -> (i32, i32) {
    %c0_i32 = arith.constant 0 : i32
    %c0_i32_0 = arith.constant 0 : i32
    %c0_i32_1 = arith.constant 0 : i32
    return %c0_i32, %c0_i32_0 : i32, i32
  }
  func.func @transform_1(%arg0: i32) -> (i32, i32) {
    %c0_i32 = arith.constant 0 : i32
    %c0_i32_0 = arith.constant 0 : i32
    return %c0_i32, %arg0 : i32, i32
  }
  func.func @transform_2(%arg0: i32) -> (i32, i32) {
    %c0_i32 = arith.constant 0 : i32
    %c0_i32_0 = arith.constant 0 : i32
    return %c0_i32, %arg0 : i32, i32
  }
}

module attributes {stable_mosaic.version = 11 : i64} {
  func.func @_edge_score_kernel(%arg0: i32, %arg1: memref<32x512xf32, #tpu.memory_space<vmem>>, %arg2: memref<32x512xf32, #tpu.memory_space<vmem>>, %arg3: memref<1x512xf32, #tpu.memory_space<vmem>>) attributes {dimension_semantics = [#tpu.dimension_semantics<parallel>], iteration_bounds = array<i64: 2>, scalar_prefetch = 0 : i64, scratch_operands = 0 : i64, tpu.core_type = #tpu.core_type<tc>, window_params = [{transform_indices = @transform_0, window_bounds = array<i64: 32, 512>}, {transform_indices = @transform_1, window_bounds = array<i64: 32, 512>}, {transform_indices = @transform_2, window_bounds = array<i64: 1, 512>}]} {
    %c0 = arith.constant 0 : index
    %c0_0 = arith.constant 0 : index
    %0 = vector.load %arg1[%c0, %c0_0] : memref<32x512xf32, #tpu.memory_space<vmem>>, vector<32x512xf32>
    %c0_1 = arith.constant 0 : index
    %c0_2 = arith.constant 0 : index
    %1 = vector.load %arg2[%c0_1, %c0_2] : memref<32x512xf32, #tpu.memory_space<vmem>>, vector<32x512xf32>
    %2 = arith.mulf %0, %1 : vector<32x512xf32>
    %cst = arith.constant dense<0.000000e+00> : vector<512xf32>
    %3 = vector.multi_reduction <add>, %2, %cst [0] : vector<32x512xf32> to vector<512xf32>
    %4 = vector.shape_cast %3 : vector<512xf32> to vector<1x512xf32>
    %c0_3 = arith.constant 0 : index
    %c0_4 = arith.constant 0 : index
    %5 = vector.load %arg3[%c0_3, %c0_4] : memref<1x512xf32, #tpu.memory_space<vmem>>, vector<1x512xf32>
    tpu.vector_store %arg3[%c0_3, %c0_4], %4 {strides = array<i32>} : memref<1x512xf32, #tpu.memory_space<vmem>>, vector<1x512xf32>,
    return
  }
  func.func @transform_0(%arg0: i32) -> (i32, i32) {
    %c0_i32 = arith.constant 0 : i32
    %c0_i32_0 = arith.constant 0 : i32
    return %c0_i32, %arg0 : i32, i32
  }
  func.func @transform_1(%arg0: i32) -> (i32, i32) {
    %c0_i32 = arith.constant 0 : i32
    %c0_i32_0 = arith.constant 0 : i32
    return %c0_i32, %arg0 : i32, i32
  }
  func.func @transform_2(%arg0: i32) -> (i32, i32) {
    %c0_i32 = arith.constant 0 : i32
    %c0_i32_0 = arith.constant 0 : i32
    return %c0_i32, %arg0 : i32, i32
  }
}

</mosaic_0001>

<bundles_post_ra>
// kernel: dedicom_forward.2
= control target key start
LH: loop header
LB: loop body
LE: loop exit
PB: predicated region body
PF: predicated region fallthrough
CT: control target
= control target key end

     0   :  { %vm19_vm0 = vcmask 261120   ;;  %s218_s1 = inlined_call_operand.vmem [shape: f32[32,128], index: 1, kind: input, shape index: {}]   ;;  %s219_s0 = inlined_call_operand.vmem [shape: f32[32,32], index: 0, kind: input, shape index: {}]   ;;  %s220_s2 = inlined_call_operand.vmem [shape: f32[32,128], index: 2, kind: output, shape index: {}]  }
   0x1   :  { %v15_v0 = vld [vmem:[%s218_s1] sm:$0xff]  ;;  %v16_v1 = vld [vmem:[%s218_s1 + $0x8] sm:$0xff]  ;;  %v17_v2 = vld [vmem:[%s218_s1 + $0x10] sm:$0xff] }
   0x2   :  { %v151_v3 = vpack.c.bf16 %v16_v1, %v15_v0  ;;  %v18_v4 = vld [vmem:[%s218_s1 + $0x18] sm:$0xff]  ;;  %v11_v5 = vld [vmem:[%s219_s0] sm:$0xff]  ;;  %v13_v6 = vld [vmem:[%s219_s0 + $0x10] sm:$0xff] }
   0x3   :  { %v155_v7 = vpack.c.bf16 %v18_v4, %v17_v2  ;;  %145 = vmatprep.mubr.msk.f32.mxu0 %vm19_vm0, %v11_v5  ;;  %148 = vmatprep.mubr.msk.f32.mxu1 %vm19_vm0, %v13_v6  ;;  %v12_v8 = vld [vmem:[%s219_s0 + $0x8] sm:$0xff]  ;;  %v14_v9 = vld [vmem:[%s219_s0 + $0x18] sm:$0xff] }
   0x4   :  { %152 = vmatprep.subr.bf16.mxu0 %v151_v3  ;;  %159 = vmatprep.subr.bf16.mxu1 %v151_v3 }
   0x5   :  { %154 = vmatpush3.bf16.msra.mxu0 %v151_v3  ;;  %161 = vmatpush3.bf16.msra.mxu1 %v151_v3 }
   0x6   :  { %156 = vmatprep.subr.bf16.mxu0 %v155_v7  ;;  %160 = vmatprep.subr.bf16.mxu1 %v155_v7 }
   0x9   :  { %158 = vmatpush3.bf16.msra.mxu0 %v155_v7  ;;  %162 = vmatpush3.bf16.msra.mxu1 %v155_v7 }
   0xc   :  { %146 = vmatmul.mubr.msk.f32.vlgmr.msra.gmra.mrb[0].mxu0 %vm19_vm0, %v12_v8  ;;  %149 = vmatmul.mubr.msk.f32.vlgmr.msra.gmra.mrb[0].mxu1 %vm19_vm0, %v14_v9 }
  0xdf   :  { %v147_v10 = vpop.f32.mrb[0].mxu0  ;;  %v150_v11 = vpop.f32.mrb[0].mxu1 }
  0xe0   :  { %118 = vst [vmem:[%s220_s2 + $0x8] sm:$0xff] %v147_v10  ;;  %120 = vst [vmem:[%s220_s2 + $0x18] sm:$0xff] %v150_v11  ;;  %v98_v12 = vpop.f32.mrb[1].mxu0  ;;  %v108_v13 = vpop.f32.mrb[1].mxu1 }
  0xe1   :  { %117 = vst [vmem:[%s220_s2] sm:$0xff] %v98_v12  ;;  %119 = vst [vmem:[%s220_s2 + $0x10] sm:$0xff] %v108_v13 }

// kernel: dedicom_forward.3
= control target key start
LH: loop header
LB: loop body
LE: loop exit
PB: predicated region body
PF: predicated region fallthrough
CT: control target
= control target key end

     0   :  { %7 = vsyncpa [#allocation5], 0  ;;  %s782_s0 = inlined_call_operand.vmem [shape: f32[32,1024], index: 0, kind: input, shape index: {}]   ;;  %s783_s1 = inlined_call_operand.vmem [shape: f32[32,1024], index: 1, kind: input, shape index: {}]   ;;  %s784_s2 = inlined_call_operand.hbm [shape: f32[1,1024], index: 2, kind: output, shape index: {}]  }
   0x1   :  { %9 = vsyncpa [#allocation5 + $0x1], 0  ;;  %s623_s9 = smov 0   ;;  %s625_s10 = smov 0  }
   0x2   :  { %s627_s11 = smov 0   ;;  %s629_s12 = smov 0  }
   0x3 LB: > { %s480_s13 = sadd.s32 4294967295, %s604_s12   ;;  %s481_s14 = sadd.s32 4294967294, %s604_s12   ;;  %s604_s12 = sphi %s629_s12, %s791_s12   ;;  %s600_s11 = sphi %s627_s11, %s790_s11   ;;  %s596_s10 = sphi %s625_s10, %s789_s10   ;;  %s592_s9 = sphi %s623_s9, %s788_s9  }
   0x4   : > { %s646_s15 = sadd.s32 1, %s604_s12   ;;  %s22_s16 = sadd.s32 1, %s600_s11 }
   0x5   : > { %s19_s17 = ssub.s32 %s604_s12, %s646_s15  ;;  %p29_p0 = scmp.ne.s32.totalorder %s600_s11, %s596_s10 }
   0x6   : > { %p20_p1 = scmp.eq.s32.totalorder %s19_s17, 0  ;;  %p30_p2 = scmp.eq.s32.totalorder %s604_s12, 0 }
   0x7   : > { %p85_p3 = scmp.eq.s32.totalorder %s480_s13, 1  ;;  %p90_p4 = scmp.ne.s32.totalorder %s596_s10, %s592_s9 }
   0x8   : > { %s659_s18 = scalar_select %p20_p1, %s600_s11, %s22_s16  }
   0x9   : > { %p661_p5 = por %p30_p2, %p29_p0  ;;  %p665_p6 = por %p85_p3, %p29_p0 }
   0xa   : > { %p91_p7 = scmp.eq.s32.totalorder %s481_s14, 1  ;;  %p483_p9 = scmp.ge.s32.totalorder %s604_s12, 2 }
   0xc   : > { %p669_p8 = por %p91_p7, %p90_p4  ;;  %107 = sbr.rel (%p483_p9) target bundleno = 43 (0x2b), region = 16 }
  0x13   : > { %110 = sbr.rel (!%p661_p5) target bundleno = 31 (0x1f), region = 20  ;;  %s112_s22 = sand.u32 (%p661_p5), 1, %s600_s11  }
  0x14   : > { %s499_s23 = sshll.u32 (%p661_p5), %s604_s12, 5  ;;  %s484_s24 = sshll.u32 (%p661_p5), %s112_s22, 7 }
  0x15   : > { %s683_s27 = scalar_lea.vmem (%p661_p5), %s782_s0, %s499_s23  ;;  %s114_s28 = scalar_lea.vmem (%p661_p5), [#allocation2], %s484_s24 }
  0x16   : > { %v130_v0 = vld [vmem:[%s683_s27] sm:$0xff] (%p661_p5)  ;;  %v132_v1 = vld [vmem:[%s683_s27 + $0x8] sm:$0xff] (%p661_p5)  ;;  %v134_v2 = vld [vmem:[%s683_s27 + $0x10] sm:$0xff] (%p661_p5) }
  0x17   : > { %131 = vst [vmem:[%s114_s28] sm:$0xff] (%p661_p5), %v130_v0  ;;  %133 = vst [vmem:[%s114_s28 + $0x8] sm:$0xff] (%p661_p5), %v132_v1  ;;  %v136_v3 = vld [vmem:[%s683_s27 + $0x18] sm:$0xff] (%p661_p5)  ;;  %v138_v4 = vld [vmem:[%s683_s27 + $0x40] sm:$0xff] (%p661_p5) }
  0x18   : > { %135 = vst [vmem:[%s114_s28 + $0x10] sm:$0xff] (%p661_p5), %v134_v2  ;;  %v140_v5 = vld [vmem:[%s683_s27 + $0x48] sm:$0xff] (%p661_p5)  ;;  %137 = vst [vmem:[%s114_s28 + $0x18] sm:$0xff] (%p661_p5), %v136_v3  ;;  %v142_v6 = vld [vmem:[%s683_s27 + $0x50] sm:$0xff] (%p661_p5) }
  0x19   : > { %139 = vst [vmem:[%s114_s28 + $0x20] sm:$0xff] (%p661_p5), %v138_v4  ;;  %141 = vst [vmem:[%s114_s28 + $0x28] sm:$0xff] (%p661_p5), %v140_v5  ;;  %v144_v7 = vld [vmem:[%s683_s27 + $0x58] sm:$0xff] (%p661_p5)  ;;  %v146_v8 = vld [vmem:[%s683_s27 + $0x80] sm:$0xff] (%p661_p5) }
  0x1a   : > { %143 = vst [vmem:[%s114_s28 + $0x30] sm:$0xff] %v142_v6  ;;  %145 = vst [vmem:[%s114_s28 + $0x38] sm:$0xff] %v144_v7  ;;  %v148_v9 = vld [vmem:[%s683_s27 + $0x88] sm:$0xff]  ;;  %v150_v10 = vld [vmem:[%s683_s27 + $0x90] sm:$0xff] }
  0x1b   : > { %147 = vst [vmem:[%s114_s28 + $0x40] sm:$0xff] %v146_v8  ;;  %v152_v11 = vld [vmem:[%s683_s27 + $0x98] sm:$0xff]  ;;  %149 = vst [vmem:[%s114_s28 + $0x48] sm:$0xff] %v148_v9  ;;  %v154_v12 = vld [vmem:[%s683_s27 + $0xc0] sm:$0xff] }
  0x1c   : > { %151 = vst [vmem:[%s114_s28 + $0x50] sm:$0xff] %v150_v10  ;;  %153 = vst [vmem:[%s114_s28 + $0x58] sm:$0xff] %v152_v11  ;;  %v156_v13 = vld [vmem:[%s683_s27 + $0xc8] sm:$0xff]  ;;  %v158_v14 = vld [vmem:[%s683_s27 + $0xd0] sm:$0xff] }
  0x1d   : > { %155 = vst [vmem:[%s114_s28 + $0x60] sm:$0xff] %v154_v12  ;;  %157 = vst [vmem:[%s114_s28 + $0x68] sm:$0xff] %v156_v13  ;;  %v160_v15 = vld [vmem:[%s683_s27 + $0xd8] sm:$0xff] }
  0x1e   : > { %159 = vst [vmem:[%s114_s28 + $0x70] sm:$0xff] %v158_v14  ;;  %161 = vst [vmem:[%s114_s28 + $0x78] sm:$0xff] %v160_v15 }
  0x1f PF: > { %167 = sbr.rel (!%p661_p5) target bundleno = 43 (0x2b), region = 43  ;;  %s169_s29 = sand.u32 (%p661_p5), 1, %s600_s11  }
  0x20   : > { %s500_s30 = sshll.u32 (%p661_p5), %s604_s12, 5  ;;  %s487_s3 = sshll.u32 (%p661_p5), %s169_s29, 7 }
  0x21   : > { %s708_s6 = scalar_lea.vmem (%p661_p5), %s783_s1, %s500_s30  ;;  %s171_s7 = scalar_lea.vmem (%p661_p5), [#allocation3], %s487_s3 }
  0x22   : > { %v187_v16 = vld [vmem:[%s708_s6] sm:$0xff] (%p661_p5)  ;;  %v189_v17 = vld [vmem:[%s708_s6 + $0x8] sm:$0xff] (%p661_p5)  ;;  %v191_v18 = vld [vmem:[%s708_s6 + $0x10] sm:$0xff] (%p661_p5) }
  0x23   : > { %188 = vst [vmem:[%s171_s7] sm:$0xff] (%p661_p5), %v187_v16  ;;  %190 = vst [vmem:[%s171_s7 + $0x8] sm:$0xff] (%p661_p5), %v189_v17  ;;  %v193_v19 = vld [vmem:[%s708_s6 + $0x18] sm:$0xff] (%p661_p5)  ;;  %v195_v20 = vld [vmem:[%s708_s6 + $0x40] sm:$0xff] (%p661_p5) }
  0x24   : > { %192 = vst [vmem:[%s171_s7 + $0x10] sm:$0xff] (%p661_p5), %v191_v18  ;;  %v197_v21 = vld [vmem:[%s708_s6 + $0x48] sm:$0xff] (%p661_p5)  ;;  %194 = vst [vmem:[%s171_s7 + $0x18] sm:$0xff] (%p661_p5), %v193_v19  ;;  %v199_v22 = vld [vmem:[%s708_s6 + $0x50] sm:$0xff] (%p661_p5) }
  0x25   : > { %196 = vst [vmem:[%s171_s7 + $0x20] sm:$0xff] (%p661_p5), %v195_v20  ;;  %198 = vst [vmem:[%s171_s7 + $0x28] sm:$0xff] (%p661_p5), %v197_v21  ;;  %v201_v23 = vld [vmem:[%s708_s6 + $0x58] sm:$0xff] (%p661_p5)  ;;  %v203_v24 = vld [vmem:[%s708_s6 + $0x80] sm:$0xff] (%p661_p5) }
  0x26   : > { %200 = vst [vmem:[%s171_s7 + $0x30] sm:$0xff] %v199_v22  ;;  %202 = vst [vmem:[%s171_s7 + $0x38] sm:$0xff] %v201_v23  ;;  %v205_v25 = vld [vmem:[%s708_s6 + $0x88] sm:$0xff]  ;;  %v207_v26 = vld [vmem:[%s708_s6 + $0x90] sm:$0xff] }
  0x27   : > { %204 = vst [vmem:[%s171_s7 + $0x40] sm:$0xff] %v203_v24  ;;  %v209_v27 = vld [vmem:[%s708_s6 + $0x98] sm:$0xff]  ;;  %206 = vst [vmem:[%s171_s7 + $0x48] sm:$0xff] %v205_v25  ;;  %v211_v28 = vld [vmem:[%s708_s6 + $0xc0] sm:$0xff] }
  0x28   : > { %208 = vst [vmem:[%s171_s7 + $0x50] sm:$0xff] %v207_v26  ;;  %210 = vst [vmem:[%s171_s7 + $0x58] sm:$0xff] %v209_v27  ;;  %v213_v29 = vld [vmem:[%s708_s6 + $0xc8] sm:$0xff]  ;;  %v215_v30 = vld [vmem:[%s708_s6 + $0xd0] sm:$0xff] }
  0x29   : > { %212 = vst [vmem:[%s171_s7 + $0x60] sm:$0xff] %v211_v28  ;;  %214 = vst [vmem:[%s171_s7 + $0x68] sm:$0xff] %v213_v29  ;;  %v217_v31 = vld [vmem:[%s708_s6 + $0xd8] sm:$0xff] }
  0x2a   : > { %216 = vst [vmem:[%s171_s7 + $0x70] sm:$0xff] %v215_v30  ;;  %218 = vst [vmem:[%s171_s7 + $0x78] sm:$0xff] %v217_v31 }
  0x2b PF: > { %p490_p10 = scmp.ge.s32.totalorder %s604_s12, 1  ;;  %p223_p11 = scmp.lt.s32.totalorder %s604_s12, 3 }
  0x2d   : > { %p224_p12 = pnand %p490_p10, %p223_p11 }
  0x2e   : > { %s729_s8 = sand.u32 (!%p224_p12), 1, %s596_s10   ;;  %s501_s24 = sshll.u32 (!%p224_p12), %s480_s13, 6 }
  0x2f   : > { %227 = sbr.rel (%p224_p12) target bundleno = 101 (0x65), region = 66  ;;  %s491_s14 = sshll.u32 (!%p224_p12), %s729_s8, 7 }
  0x30   : > { %s232_s16 = scalar_lea.vmem (!%p224_p12), [#allocation2], %s491_s14  ;;  %s239_s17 = scalar_lea.vmem (!%p224_p12), [#allocation3], %s491_s14 }
  0x31   : > { %v265_v32 = vld [vmem:[%s232_s16] sm:$0xff] (!%p224_p12)  ;;  %v266_v33 = vld [vmem:[%s232_s16 + $0x8] sm:$0xff] (!%p224_p12)  ;;  %v267_v34 = vld [vmem:[%s232_s16 + $0x10] sm:$0xff] (!%p224_p12)  ;;  %s493_s19 = sshll.u32 (!%p224_p12), %s729_s8, 2  ;;  %s740_s27 = scalar_lea.hbm (!%p224_p12), %s784_s2, %s501_s24 }
  0x32   : > { %v269_v35 = vld [vmem:[%s232_s16 + $0x20] sm:$0xff] (!%p224_p12)  ;;  %v268_v36 = vld [vmem:[%s232_s16 + $0x18] sm:$0xff] (!%p224_p12)  ;;  %v270_v37 = vld [vmem:[%s232_s16 + $0x28] sm:$0xff] (!%p224_p12)  ;;  %s261_s22 = scalar_lea.vmem (!%p224_p12), [#allocation4], %s493_s19  ;;  %s384_s28 = scalar_lea.sflag (!%p224_p12), [#allocation5], %s729_s8 }
  0x33   : > { %v271_v38 = vld [vmem:[%s232_s16 + $0x30] sm:$0xff] (!%p224_p12)  ;;  %v272_v39 = vld [vmem:[%s232_s16 + $0x38] sm:$0xff] (!%p224_p12)  ;;  %v273_v40 = vld [vmem:[%s232_s16 + $0x40] sm:$0xff] (!%p224_p12)  ;;  %s398_s23 = sshll.u32 (!%p224_p12), %s261_s22, 4  ;;  %s607_s13 = smov (!%p224_p12), [#allocation4]   ;;  %s735_s23 = int_to_ptr.vmem [resolvable:$true] %s398_s23 }
  0x34   : > { %v274_v41 = vld [vmem:[%s232_s16 + $0x48] sm:$0xff] (!%p224_p12)  ;;  %v275_v42 = vld [vmem:[%s232_s16 + $0x50] sm:$0xff] (!%p224_p12)  ;;  %v276_v43 = vld [vmem:[%s232_s16 + $0x58] sm:$0xff] (!%p224_p12)  ;;  %s542_s29 = scalar_lea.vmem (!%p224_p12), %s735_s23, 64  ;;  %s546_s30 = sshll.u32 (!%p224_p12), %s607_s13, 4  ;;  %s547_s30 = int_to_ptr.vmem [resolvable:$false] %s546_s30 }
  0x35   : > { %v277_v44 = vld [vmem:[%s232_s16 + $0x60] sm:$0xff] (!%p224_p12)  ;;  %v278_v45 = vld [vmem:[%s232_s16 + $0x68] sm:$0xff] (!%p224_p12)  ;;  %v279_v48 = vld [vmem:[%s232_s16 + $0x70] sm:$0xff] (!%p224_p12)  ;;  %p543_p13 = scmp.ne.s32.totalorder (!%p224_p12), %s735_s23, %s542_s29  ;;  %s548_s3 = scalar_lea.vmem (!%p224_p12), %s547_s30, 128 }
  0x36   : > { %v281_v46 = vld [vmem:[%s239_s17] sm:$0xff]  ;;  %v282_v47 = vld [vmem:[%s239_s17 + $0x8] sm:$0xff]  ;;  %v283_v49 = vld [vmem:[%s239_s17 + $0x10] sm:$0xff]  ;;  %p549_p2 = scmp.lt.s32.totalorder %s735_s23, %s547_s30  ;;  %p550_p3 = scmp.lt.s32.totalorder %s548_s3, %s542_s29 }
  0x37   : > { %v284_v50 = vld [vmem:[%s239_s17 + $0x18] sm:$0xff]  ;;  %v285_v51 = vld [vmem:[%s239_s17 + $0x20] sm:$0xff]  ;;  %v297_v52 = vmul.f32 %v281_v46, %v265_v32  ;;  %v298_v53 = vmul.f32 %v282_v47, %v266_v33  ;;  %v286_v55 = vld [vmem:[%s239_s17 + $0x28] sm:$0xff]  ;;  %v299_v58 = vmul.f32 %v283_v49, %v267_v34  ;;  %v606_v34 = vmov 1966171168   ;;  %p544_p0 = pnand %p543_p13, %p665_p6 }
  0x38   : > { %v280_v54 = vld [vmem:[%s232_s16 + $0x78] sm:$0xff]  ;;  %v287_v56 = vld [vmem:[%s239_s17 + $0x30] sm:$0xff]  ;;  %v301_v59 = vmul.f32 %v285_v51, %v269_v35  ;;  %v289_v60 = vld [vmem:[%s239_s17 + $0x40] sm:$0xff]  ;;  %v300_v63 = vmul.f32 %v284_v50, %v268_v36  ;;  %v302_v0 = vmul.f32 %v286_v55, %v270_v37  ;;  %v356_v35 = vunpack.c.l.s4 %v606_v34  ;;  %p551_p4 = por %p550_p3, %p549_p2 }
  0x39   : > { %v288_v57 = vld [vmem:[%s239_s17 + $0x38] sm:$0xff]  ;;  %v290_v61 = vld [vmem:[%s239_s17 + $0x48] sm:$0xff]  ;;  %v291_v62 = vld [vmem:[%s239_s17 + $0x50] sm:$0xff]  ;;  %v303_v1 = vmul.f32 %v287_v56, %v271_v38  ;;  %v305_v6 = vmul.f32 %v289_v60, %v273_v40  ;;  %v358_v36 = vlaneseq  ;;  %p545_p1 = pneg %p544_p0 }
  0x3a   : > { %v304_v2 = vmul.f32 %v288_v57, %v272_v39  ;;  %v292_v3 = vld [vmem:[%s239_s17 + $0x58] sm:$0xff]  ;;  %v293_v4 = vld [vmem:[%s239_s17 + $0x60] sm:$0xff]  ;;  %v294_v5 = vld [vmem:[%s239_s17 + $0x68] sm:$0xff]  ;;  %v306_v7 = vmul.f32 %v290_v61, %v274_v41  ;;  %v307_v8 = vmul.f32 %v291_v62, %v275_v42  ;;  %v313_v9 = vadd.f32 %v301_v59, %v297_v52 }
  0x3b   : > { %v295_v10 = vld [vmem:[%s239_s17 + $0x70] sm:$0xff]  ;;  %v296_v11 = vld [vmem:[%s239_s17 + $0x78] sm:$0xff]  ;;  %v308_v12 = vmul.f32 %v292_v3, %v276_v43  ;;  %v309_v13 = vmul.f32 %v293_v4, %v277_v44  ;;  %v310_v14 = vmul.f32 %v294_v5, %v278_v45  ;;  %v322_v15 = vadd.f32 %v302_v0, %v298_v53  ;;  %p552_p5 = pnand %p551_p4, %p545_p1 }
  0x3c   : > { %v311_v16 = vmul.f32 %v295_v10, %v279_v48  ;;  %v314_v17 = vadd.f32 %v313_v9, %v305_v6  ;;  %v331_v18 = vadd.f32 %v303_v1, %v299_v58  ;;  %v312_v19 = vmul.f32 %v296_v11, %v280_v54 }
  0x3d   : > { %v323_v20 = vadd.f32 %v322_v15, %v306_v7  ;;  %v340_v21 = vadd.f32 %v304_v2, %v300_v63  ;;  %v357_v45 = vunpack.c.0.s8 %v356_v35  ;;  %v359_v46 = vshrl.u32 %v358_v36, 7 }
  0x3e   : > { %v315_v22 = vadd.f32 %v314_v17, %v309_v13  ;;  %v332_v23 = vadd.f32 %v331_v18, %v307_v8  ;;  %vm380_vm0 = vcmp.lt.s32.totalorder %v358_v36, 512 }
  0x3f   : > { %v324_v24 = vadd.f32 %v323_v20, %v310_v14  ;;  %v341_v25 = vadd.f32 %v340_v21, %v308_v12  ;;  %v360_v55 = vsub.s32 %v357_v45, %v359_v46 }
  0x40   : > { %v316_v26 = vrot.slane %v315_v22, 4  ;;  %v333_v27 = vadd.f32 %v332_v23, %v311_v16 }
  0x41   : > { %v325_v28 = vrot.slane %v324_v24, 4  ;;  %v342_v29 = vadd.f32 %v341_v25, %v312_v19 }
  0x42   : > { %v317_v30 = vadd.f32 %v316_v26, %v315_v22  ;;  %v334_v31 = vrot.slane %v333_v27, 4 }
  0x43   : > { %v326_v32 = vadd.f32 %v325_v28, %v324_v24  ;;  %v343_v33 = vrot.slane %v342_v29, 4 }
  0x44   : > { %v318_v37 = vrot.slane %v317_v30, 2  ;;  %v335_v38 = vadd.f32 %v334_v31, %v333_v27 }
  0x45   : > { %v327_v39 = vrot.slane %v326_v32, 2  ;;  %v344_v40 = vadd.f32 %v343_v33, %v342_v29 }
  0x46   : > { %v319_v41 = vadd.f32 %v318_v37, %v317_v30  ;;  %v336_v42 = vrot.slane %v335_v38, 2 }
  0x47   : > { %v328_v43 = vadd.f32 %v327_v39, %v326_v32  ;;  %v345_v44 = vrot.slane %v344_v40, 2 }
  0x48   : > { %v320_v47 = vrot.slane %v319_v41, 1  ;;  %v337_v48 = vadd.f32 %v336_v42, %v335_v38 }
  0x49   : > { %v329_v49 = vrot.slane %v328_v43, 1  ;;  %v346_v50 = vadd.f32 %v345_v44, %v344_v40 }
  0x4a   : > { %v321_v51 = vadd.f32 %v320_v47, %v319_v41  ;;  %v338_v52 = vrot.slane %v337_v48, 1 }
  0x4b   : > { %v330_v53 = vadd.f32 %v329_v49, %v328_v43  ;;  %v347_v54 = vrot.slane %v346_v50, 1 }
  0x4c   : > { %v339_v56 = vadd.f32 %v338_v52, %v337_v48 }
  0x4d   : > { %v348_v57 = vadd.f32 %v347_v54, %v346_v50  ;;  %v353_v58 = vcombine.low %v321_v51, %v330_v53 }
  0x4f   : > { %v354_v59 = vcombine.low %v339_v56, %v348_v57  ;;  %v361_v60 = vrot.slane %v353_v58, %v360_v55 }
  0x51   : > { %v368_v61 = vrot.slane %v354_v59, %v360_v55 }
  0x53   : > { %v369_v62 = vcombine.low %v361_v60, %v368_v61 }
  0x55   : > { %v376_v63 = vrot.slane %v369_v62, %v360_v55 }
  0x57   : > { %382 = vst.msk [vmem:[%s261_s22] sm:$0xf] %vm380_vm0, %v376_v63 }
  0x58   : > { %555 = shalt.err (!%p552_p5)
}
  0x59   : > { %s556_s4 = scalar_lea.hbm %s740_s27, 64  ;;  %s560_s7 = scalar_lea.hbm %s784_s2, 128 }
  0x5a   : > { %p557_p7 = scmp.ne.s32.totalorder %s740_s27, %s556_s4  ;;  %p561_p12 = scmp.lt.u32.totalorder %s740_s27, %s784_s2 }
  0x5b   : > { %p562_p13 = scmp.lt.u32.totalorder %s560_s7, %s556_s4  ;;  %p564_p1 = scmp.lt.u32.totalorder %s556_s4, %s740_s27 }
  0x5c   : > { %p558_p10 = pnand %p557_p7, %p665_p6 }
  0x5d   : > { %p563_p0 = por %p562_p13, %p561_p12 }
  0x5e   : > { %p559_p11 = pneg %p558_p10 }
  0x5f   : > { %p565_p2 = por %p564_p1, %p563_p0 }
  0x61   : > { %p566_p3 = pnand %p565_p2, %p559_p11 }
  0x63   : > { %569 = shalt.err (!%p566_p3)
}
  0x64   : > { %502 = dma.vmem_to_hbm [thread:$0]  (%p665_p6), %s735_s23, 64, %s740_s27, %s384_s28  }
  0x65 PF: > { %s410_s16 = sand.u32 1, %s592_s9   ;;  %p505_p4 = pnand %p483_p9, %p669_p8 }
  0x66   : > { %s411_s17 = scalar_lea.sflag [#allocation5], %s410_s16 }
  0x67   : > { %587 = dma.done.wait (!%p505_p4), %s411_s17, 64  }
  0x68   : > { %589 = vsyncadd (!%p505_p4), %s411_s17, 4294967232  ;;  %p12_p5 = scmp.ge.s32.totalorder %s646_s15, 4   ;;  %s788_s9 = smov %s596_s10 }
  0x69   : > { %s789_s10 = smov %s600_s11  ;;  %s790_s11 = smov %s659_s18 }
  0x6a   : > { %s791_s12 = smov %s646_s15  ;;  %14 = sbr.rel (!%p12_p5) target bundleno = 3 (0x3), region = 122 }
  0x71   :  { %416 = vsyncpa [#allocation5], 1 }
  0x72   :  { %418 = vsyncpa [#allocation5 + $0x1], 1 }

</bundles_post_ra>
